<compile_context>
chip_gen: v5e
topology: v5e:2x2
jax: 0.10.0
libtpu: 0.0.40
codegen_flags: <defaults>
</compile_context>

<pallas_src>
import jax
import jax.numpy as jnp
from jax import lax
from jax.experimental import pallas as pl
from jax.experimental.pallas import tpu as pltpu


def _round_up(n, m):
    return (n + m - 1) // m * m


def _dropout_model_kernel(x_ref, w1_ref, b1_ref, w2_ref, b2_ref, out_ref):
    # Dropout layers are identity in eval mode.
    # Layer 1: contract over F with x in its natural (TILE_B, F) layout.
    #   (Hpad, F) @ (TILE_B, F)^T -> (Hpad, TILE_B)   (lane-dense, f32 accum)
    hT = lax.dot_general(
        w1_ref[...], x_ref[...],
        dimension_numbers=(((1,), (1,)), ((), ())),
        preferred_element_type=jnp.float32,
    )
    hT = jnp.maximum(hT + b1_ref[...], 0.0)          # bias (Hpad, 1) broadcasts
    # Layer 2 (H -> 1): VPU elementwise multiply + sublane (XLU) reduce keeps
    # the result lane-dense as a (1, TILE_B) row.
    yT = jnp.sum(hT * w2_ref[...], axis=0, keepdims=True) + b2_ref[...]
    out_ref[...] = yT


def dropout_model_forward(x, w1, b1, w2, b2, *, tile_b=4096):
    """Forward pass of DropoutModel (eval mode).

    Args:
      x:  (B, F) float input.
      w1: (50, F) — torch nn.Linear layout (out_features, in_features).
      b1: (50,).
      w2: (1, 50) — torch nn.Linear layout.
      b2: (1,).

    Returns:
      y_hat of shape (B, 1), float32.
    """
    B, F = x.shape
    H = w1.shape[0]
    Hpad = _round_up(H, 64)      # 64 = clean multiple of bf16 sublane pack (16)

    f32, bf16 = jnp.float32, jnp.bfloat16

    # --- Batch padding / tile selection -------------------------------------
    # Pad batch only to the 128-lane multiple (no near-full-tile waste).
    B_pad = _round_up(B, 128)

    # VMEM-budget-aware tile: conservative 40 MiB per-TC budget is safe on
    # v7x (64 MiB physical per TC) and leaves ample headroom on v5e/v6e.
    VMEM_BUDGET = 40 * 1024 * 1024
    resident = 2 * Hpad * F * 2 + 4 * Hpad * 4 + 256        # w1 (x2) + biases
    per_row = 2 * F * 2 + 2 * 4          # x tile (x2 bufs, bf16) + out (x2, f32)
    tile_cap = max(128, (VMEM_BUDGET - resident) // per_row // 128 * 128)

    tile_b_eff = max(128, min(tile_b, tile_cap, B_pad) // 128 * 128)
    # Snap to a divisor of B_pad so every grid step is a full tile.
    while B_pad % tile_b_eff:
        tile_b_eff -= 128
    grid = (B_pad // tile_b_eff,)

    # --- Parameter / input packing (one-time, tiny) --------------------------
    w1p = jnp.zeros((Hpad, F), bf16).at[:H, :].set(w1.astype(bf16))
    b1p = jnp.zeros((Hpad, 1), f32).at[:H, 0].set(b1.astype(f32))
    w2p = jnp.zeros((Hpad, 1), f32).at[:H, 0].set(w2.reshape(-1).astype(f32))
    b2p = b2.reshape(1, 1).astype(f32)

    if B_pad != B:
        xb = jnp.zeros((B_pad, F), bf16).at[:B, :].set(x.astype(bf16))
    else:
        xb = x.astype(bf16)                       # no transpose, no extra copy

    out = pl.pallas_call(
        _dropout_model_kernel,
        out_shape=jax.ShapeDtypeStruct((1, B_pad), f32),
        grid_spec=pltpu.PrefetchScalarGridSpec(
            num_scalar_prefetch=0,
            grid=grid,
            in_specs=[
                # x tile streams along the batch axis (natural row-major).
                pl.BlockSpec((tile_b_eff, F), lambda i: (i, 0)),
                # Weights / biases: VMEM-resident across all grid steps.
                pl.BlockSpec((Hpad, F), lambda i: (0, 0)),
                pl.BlockSpec((Hpad, 1), lambda i: (0, 0)),
                pl.BlockSpec((Hpad, 1), lambda i: (0, 0)),
                pl.BlockSpec((1, 1), lambda i: (0, 0)),
            ],
            out_specs=pl.BlockSpec((1, tile_b_eff), lambda i: (0, i)),
        ),
        compiler_params=pltpu.CompilerParams(
            dimension_semantics=("parallel",),        # batch tiles independent
            vmem_limit_bytes=48 * 1024 * 1024,        # < v7x 64 MiB/TC physical
        ),
    )(xb, w1p, b1p, w2p, b2p)

    return out[0, :B].reshape(B, 1)


if __name__ == "__main__":
    # Small shapes consistent with the module: batch=8, n_features=32, H=50.
    B, F, H = 8, 32, 50

    key = jax.random.PRNGKey(0)
    kx, kw1, kb1, kw2, kb2 = jax.random.split(key, 5)

    x = jax.random.normal(kx, (B, F), dtype=jnp.float32)

    # Deterministic parameter init (uniform, like torch Linear default range),
    # stored in torch layout (out_features, in_features).
    lim1 = 1.0 / (F ** 0.5)
    w1 = jax.random.uniform(kw1, (H, F), jnp.float32, -lim1, lim1)
    b1 = jax.random.uniform(kb1, (H,), jnp.float32, -lim1, lim1)
    lim2 = 1.0 / (H ** 0.5)
    w2 = jax.random.uniform(kw2, (1, H), jnp.float32, -lim2, lim2)
    b2 = jax.random.uniform(kb2, (1,), jnp.float32, -lim2, lim2)

    y = dropout_model_forward(x, w1, b1, w2, b2)
    jax.block_until_ready(y)
    assert y.shape == (B, 1), f"bad output shape {y.shape}"

    # Reference 1: same bf16-rounded inputs/weights, f32 math (tight check of
    # the kernel's MXU/VPU path).
    xb = x.astype(jnp.bfloat16).astype(jnp.float32)
    w1b = w1.astype(jnp.bfloat16).astype(jnp.float32)
    h_ref = jnp.maximum(xb @ w1b.T + b1, 0.0)
    y_ref = h_ref @ w2.T + b2
    assert jnp.allclose(y, y_ref, atol=1e-4, rtol=1e-4), "output mismatch (bf16 ref)"

    # Reference 2: pure-f32 eval-mode forward (loose check of semantics given
    # the bf16 input/weight stream).
    h_f32 = jnp.maximum(x @ w1.T + b1, 0.0)
    y_f32 = h_f32 @ w2.T + b2
    assert jnp.allclose(y, y_f32, atol=5e-2, rtol=5e-2), "output mismatch (f32 ref)"

    print("KERNEL_OK")
</pallas_src>

<mosaic_0001>
module attributes {stable_mosaic.version = 11 : i64} {
  func.func @_dropout_model_kernel(%arg0: i32, %arg1: memref<128x32xbf16, #tpu.memory_space<vmem>>, %arg2: memref<64x32xbf16, #tpu.memory_space<vmem>>, %arg3: memref<64x1xf32, #tpu.memory_space<vmem>>, %arg4: memref<64x1xf32, #tpu.memory_space<vmem>>, %arg5: memref<1x1xf32, #tpu.memory_space<vmem>>, %arg6: memref<1x128xf32, #tpu.memory_space<vmem>>) attributes {dimension_semantics = [#tpu.dimension_semantics<parallel>], iteration_bounds = array<i64: 1>, scalar_prefetch = 0 : i64, scratch_operands = 0 : i64, tpu.core_type = #tpu.core_type<tc>, window_params = [{transform_indices = @transform_0, window_bounds = array<i64: 128, 32>}, {pipeline_mode = #tpu.pipeline_mode<synchronous>, transform_indices = @transform_1, window_bounds = array<i64: 64, 32>}, {pipeline_mode = #tpu.pipeline_mode<synchronous>, transform_indices = @transform_2, window_bounds = array<i64: 64, 1>}, {pipeline_mode = #tpu.pipeline_mode<synchronous>, transform_indices = @transform_3, window_bounds = array<i64: 64, 1>}, {pipeline_mode = #tpu.pipeline_mode<synchronous>, transform_indices = @transform_4, window_bounds = array<i64: 1, 1>}, {transform_indices = @transform_5, window_bounds = array<i64: 1, 128>}]} {
    %c0 = arith.constant 0 : index
    %c0_0 = arith.constant 0 : index
    %0 = vector.load %arg2[%c0, %c0_0] : memref<64x32xbf16, #tpu.memory_space<vmem>>, vector<64x32xbf16>
    %c0_1 = arith.constant 0 : index
    %c0_2 = arith.constant 0 : index
    %1 = vector.load %arg1[%c0_1, %c0_2] : memref<128x32xbf16, #tpu.memory_space<vmem>>, vector<128x32xbf16>
    %cst = arith.constant dense<0.000000e+00> : vector<64x128xf32>
    %2 = tpu.matmul %0, %1, %cst {dimension_numbers = #tpu.dot_dimension_numbers<[1], [1], [0], [0], [0, 0, 1, 0], [], []>} : vector<64x32xbf16>, vector<128x32xbf16>, vector<64x128xf32> -> vector<64x128xf32>
    %c0_3 = arith.constant 0 : index
    %c0_4 = arith.constant 0 : index
    %3 = vector.load %arg3[%c0_3, %c0_4] : memref<64x1xf32, #tpu.memory_space<vmem>>, vector<64x1xf32>
    %4 = vector.broadcast %3 : vector<64x1xf32> to vector<64x128xf32>
    %5 = arith.addf %2, %4 : vector<64x128xf32>
    %cst_5 = arith.constant 0.000000e+00 : f32
    %6 = vector.broadcast %cst_5 : f32 to vector<64x128xf32>
    %7 = arith.maximumf %5, %6 : vector<64x128xf32>
    %c0_6 = arith.constant 0 : index
    %c0_7 = arith.constant 0 : index
    %8 = vector.load %arg4[%c0_6, %c0_7] : memref<64x1xf32, #tpu.memory_space<vmem>>, vector<64x1xf32>
    %9 = vector.broadcast %8 : vector<64x1xf32> to vector<64x128xf32>
    %10 = arith.mulf %7, %9 : vector<64x128xf32>
    %cst_8 = arith.constant dense<0.000000e+00> : vector<128xf32>
    %11 = vector.multi_reduction <add>, %10, %cst_8 [0] : vector<64x128xf32> to vector<128xf32>
    %12 = vector.shape_cast %11 : vector<128xf32> to vector<1x128xf32>
    %c0_9 = arith.constant 0 : index
    %c0_10 = arith.constant 0 : index
    %13 = vector.load %arg5[%c0_9, %c0_10] : memref<1x1xf32, #tpu.memory_space<vmem>>, vector<1x1xf32>
    %14 = vector.broadcast %13 : vector<1x1xf32> to vector<1x128xf32>
    %15 = arith.addf %12, %14 : vector<1x128xf32>
    %c0_11 = arith.constant 0 : index
    %c0_12 = arith.constant 0 : index
    %16 = vector.load %arg6[%c0_11, %c0_12] : memref<1x128xf32, #tpu.memory_space<vmem>>, vector<1x128xf32>
    tpu.vector_store %arg6[%c0_11, %c0_12], %15 {strides = array<i32>} : memref<1x128xf32, #tpu.memory_space<vmem>>, vector<1x128xf32>,
    return
  }
  func.func @transform_0(%arg0: i32) -> (i32, i32) {
    %c0_i32 = arith.constant 0 : i32
    %c0_i32_0 = arith.constant 0 : i32
    return %arg0, %c0_i32 : i32, i32
  }
  func.func @transform_1(%arg0: i32) -> (i32, i32) {
    %c0_i32 = arith.constant 0 : i32
    %c0_i32_0 = arith.constant 0 : i32
    %c0_i32_1 = arith.constant 0 : i32
    return %c0_i32, %c0_i32_0 : i32, i32
  }
  func.func @transform_2(%arg0: i32) -> (i32, i32) {
    %c0_i32 = arith.constant 0 : i32
    %c0_i32_0 = arith.constant 0 : i32
    %c0_i32_1 = arith.constant 0 : i32
    return %c0_i32, %c0_i32_0 : i32, i32
  }
  func.func @transform_3(%arg0: i32) -> (i32, i32) {
    %c0_i32 = arith.constant 0 : i32
    %c0_i32_0 = arith.constant 0 : i32
    %c0_i32_1 = arith.constant 0 : i32
    return %c0_i32, %c0_i32_0 : i32, i32
  }
  func.func @transform_4(%arg0: i32) -> (i32, i32) {
    %c0_i32 = arith.constant 0 : i32
    %c0_i32_0 = arith.constant 0 : i32
    %c0_i32_1 = arith.constant 0 : i32
    return %c0_i32, %c0_i32_0 : i32, i32
  }
  func.func @transform_5(%arg0: i32) -> (i32, i32) {
    %c0_i32 = arith.constant 0 : i32
    %c0_i32_0 = arith.constant 0 : i32
    return %c0_i32, %arg0 : i32, i32
  }
}

</mosaic_0001>

<bundles_post_ra>
// kernel: tpu_custom_call.1
= control target key start
LH: loop header
LB: loop body
LE: loop exit
PB: predicated region body
PF: predicated region fallthrough
CT: control target
= control target key end

     0   :  { %s576_s0 = inlined_call_operand.vmem [shape: bf16[128,32], index: 0, kind: input, shape index: {}]   ;;  %s577_s1 = inlined_call_operand.vmem [shape: bf16[64,32], index: 1, kind: input, shape index: {}]   ;;  %s578_s2 = inlined_call_operand.vmem [shape: f32[64,1], index: 2, kind: input, shape index: {}]   ;;  %s579_s3 = inlined_call_operand.vmem [shape: f32[64,1], index: 3, kind: input, shape index: {}]   ;;  %s580_s4 = inlined_call_operand.<no memory space> [shape: f32[1,1], index: 4, kind: input, shape index: {}]   ;;  %s581_s5 = inlined_call_operand.hbm [shape: f32[1,128], index: 5, kind: output, shape index: {}]  }
   0x1   :  { %v10_v0 = vstv %s580_s4 }
   0x2   :  { %11 = vst [vmem:[#allocation2] sm:$0x1] %v10_v0 }
   0x3   :  { %v386_v1 = vld [vmem:[%s576_s0 + $0x38] sm:$0xff]  ;;  %vm155_vm0 = vcmask 261120   ;;  %v442_v2 = vmov 0   ;;  %v47_v3 = vld [vmem:[%s578_s2] sm:$0xff]  ;;  %v49_v4 = vld [vmem:[%s578_s2 + $0x10] sm:$0xff] }
   0x4   :  { %413 = vset.pattern.permute.xlu0 %v442_v2  ;;  %414 = vset.pattern.permute.xlu1 %v442_v2  ;;  %v190_v5 = vsel %vm155_vm0, %v386_v1, 0 }
   0x5   :  { %57 = vperm.xlu0 %413, %v47_v3   ;;  %67 = vperm.xlu1 %414, %v49_v4  }
   0x6   :  { %192 = vmatpush.bf16.xpose.msra.mxu0 %v190_v5  ;;  %387 = vmatpush.bf16.xpose.msra.mxu1 %v190_v5 }
   0x7   :  { %12 = vsyncpa [#allocation4], 0  ;;  %388 = vmatpush.bf16.xpose.msra.mxu2 %v190_v5  ;;  %389 = vmatpush.bf16.xpose.msra.mxu3 %v190_v5  ;;  %v385_v6 = vld [vmem:[%s576_s0 + $0x30] sm:$0xff]  ;;  %v48_v7 = vld [vmem:[%s578_s2 + $0x8] sm:$0xff]  ;;  %s314_s24 = sshll.u32 %s581_s5, 4  ;;  %s315_s24 = int_to_ptr.hbm [resolvable:$true] %s314_s24 }
   0x8   :  { %415 = vset.pattern.permute.xlu2 %v442_v2  ;;  %v50_v8 = vld [vmem:[%s578_s2 + $0x18] sm:$0xff]  ;;  %v187_v9 = vsel %vm155_vm0, %v385_v6, 0  ;;  %v384_v10 = vld [vmem:[%s576_s0 + $0x28] sm:$0xff]  ;;  %v229_v11 = vld [vmem:[%s579_s3] sm:$0xff] }
   0x9   :  { %v230_v12 = vld [vmem:[%s579_s3 + $0x8] sm:$0xff]  ;;  %v184_v13 = vsel %vm155_vm0, %v384_v10, 0  ;;  %v383_v14 = vld [vmem:[%s576_s0 + $0x20] sm:$0xff]  ;;  %v232_v16 = vld [vmem:[%s579_s3 + $0x18] sm:$0xff] }
   0xa   :  { %v51_v15 = vld [vmem:[%s578_s2 + $0x20] sm:$0xff]  ;;  %v53_v17 = vld [vmem:[%s578_s2 + $0x30] sm:$0xff]  ;;  %v181_v18 = vsel %vm155_vm0, %v383_v14, 0  ;;  %v382_v19 = vld [vmem:[%s576_s0 + $0x18] sm:$0xff] }
   0xb   :  { %77 = vperm.xlu2 %415, %v51_v15   ;;  %v54_v20 = vld [vmem:[%s578_s2 + $0x38] sm:$0xff]  ;;  %v234_v21 = vld [vmem:[%s579_s3 + $0x28] sm:$0xff]  ;;  %v178_v22 = vsel %vm155_vm0, %v382_v19, 0  ;;  %v381_v24 = vld [vmem:[%s576_s0 + $0x10] sm:$0xff] }
   0xc   :  { %v52_v23 = vld [vmem:[%s578_s2 + $0x28] sm:$0xff]  ;;  %v236_v25 = vld [vmem:[%s579_s3 + $0x38] sm:$0xff]  ;;  %v298_v26 = vld [vmem:[#allocation2] sm:$0x1]  ;;  %v175_v27 = vsel %vm155_vm0, %v381_v24, 0 }
   0xd   :  { %62 = vperm.xlu0 %413, %v48_v7   ;;  %72 = vperm.xlu1 %414, %v50_v8   ;;  %v231_v28 = vld [vmem:[%s579_s3 + $0x10] sm:$0xff]  ;;  %v380_v29 = vld [vmem:[%s576_s0 + $0x8] sm:$0xff]  ;;  %v233_v31 = vld [vmem:[%s579_s3 + $0x20] sm:$0xff] }
   0xe   :  { %193 = vmatpush.bf16.xpose.msra.mxu0 %v187_v9  ;;  %390 = vmatpush.bf16.xpose.msra.mxu1 %v187_v9  ;;  %v172_v30 = vsel %vm155_vm0, %v380_v29, 0  ;;  %v379_v32 = vld [vmem:[%s576_s0] sm:$0xff]  ;;  %v235_v34 = vld [vmem:[%s579_s3 + $0x30] sm:$0xff]  ;;  %v376_v36 = vld [vmem:[%s577_s1 + $0x8] sm:$0xff] }
   0xf   :  { %391 = vmatpush.bf16.xpose.msra.mxu2 %v187_v9  ;;  %392 = vmatpush.bf16.xpose.msra.mxu3 %v187_v9  ;;  %v169_v33 = vsel %vm155_vm0, %v379_v32, 0  ;;  %v375_v35 = vld [vmem:[%s577_s1] sm:$0xff]  ;;  %v377_v37 = vld [vmem:[%s577_s1 + $0x10] sm:$0xff]  ;;  %v378_v38 = vld [vmem:[%s577_s1 + $0x18] sm:$0xff]  ;;  %s443_s1 = smov [#allocation3]  }
  0x10   :  { %s312_s3 = sshll.u32 %s443_s1, 4  ;;  %s313_s3 = int_to_ptr.vmem [resolvable:$true] %s312_s3 }
  0x13   :  { %82 = vperm.xlu2 %415, %v52_v23  }
  0x15   :  { %239 = vperm.xlu0 %413, %v229_v11   ;;  %244 = vperm.xlu1 %414, %v230_v12  }
  0x16   :  { %194 = vmatpush.bf16.xpose.msra.mxu0 %v184_v13  ;;  %393 = vmatpush.bf16.xpose.msra.mxu1 %v184_v13 }
  0x17   :  { %394 = vmatpush.bf16.xpose.msra.mxu2 %v184_v13  ;;  %395 = vmatpush.bf16.xpose.msra.mxu3 %v184_v13 }
  0x1b   :  { %249 = vperm.xlu2 %415, %v231_v28  }
  0x1d   :  { %254 = vperm.xlu0 %413, %v232_v16   ;;  %87 = vperm.xlu1 %414, %v53_v17  }
  0x1e   :  { %195 = vmatpush.bf16.xpose.msra.mxu0 %v181_v18  ;;  %396 = vmatpush.bf16.xpose.msra.mxu1 %v181_v18 }
  0x1f   :  { %397 = vmatpush.bf16.xpose.msra.mxu2 %v181_v18  ;;  %398 = vmatpush.bf16.xpose.msra.mxu3 %v181_v18 }
  0x23   :  { %259 = vperm.xlu2 %415, %v233_v31  }
  0x25   :  { %92 = vperm.xlu0 %413, %v54_v20   ;;  %264 = vperm.xlu1 %414, %v234_v21  }
  0x26   :  { %196 = vmatpush.bf16.xpose.msra.mxu0 %v178_v22  ;;  %399 = vmatpush.bf16.xpose.msra.mxu1 %v178_v22 }
  0x27   :  { %400 = vmatpush.bf16.xpose.msra.mxu2 %v178_v22  ;;  %401 = vmatpush.bf16.xpose.msra.mxu3 %v178_v22 }
  0x2b   :  { %269 = vperm.xlu2 %415, %v235_v34  }
  0x2d   :  { %274 = vperm.xlu0 %413, %v236_v25   ;;  %301 = vperm.xlu1 %414, %v298_v26  }
  0x2e   :  { %197 = vmatpush.bf16.xpose.msra.mxu0 %v175_v27  ;;  %402 = vmatpush.bf16.xpose.msra.mxu1 %v175_v27 }
  0x2f   :  { %403 = vmatpush.bf16.xpose.msra.mxu2 %v175_v27  ;;  %404 = vmatpush.bf16.xpose.msra.mxu3 %v175_v27 }
  0x36   :  { %198 = vmatpush.bf16.xpose.msra.mxu0 %v172_v30  ;;  %405 = vmatpush.bf16.xpose.msra.mxu1 %v172_v30 }
  0x37   :  { %406 = vmatpush.bf16.xpose.msra.mxu2 %v172_v30  ;;  %407 = vmatpush.bf16.xpose.msra.mxu3 %v172_v30 }
  0x3e   :  { %199 = vmatpush.bf16.xpose.msra.mxu0 %v169_v33  ;;  %408 = vmatpush.bf16.xpose.msra.mxu1 %v169_v33 }
  0x3f   :  { %409 = vmatpush.bf16.xpose.msra.mxu2 %v169_v33  ;;  %410 = vmatpush.bf16.xpose.msra.mxu3 %v169_v33 }
  0x45   :  { %371 = vmatmul.msk.bf16.vlgmr.msra.gmra.mxu0 %vm155_vm0, %v375_v35  ;;  %372 = vmatmul.msk.bf16.vlgmr.msra.gmra.mxu1 %vm155_vm0, %v376_v36 }
  0x46   :  { %373 = vmatmul.msk.bf16.vlgmr.msra.gmra.mxu2 %vm155_vm0, %v377_v37  ;;  %374 = vmatmul.msk.bf16.vlgmr.msra.gmra.mxu3 %vm155_vm0, %v378_v38 }
  0x65   :  { %v78_v41 = vpop.permute.xlu2 %77 }
  0x6d   :  { %v83_v44 = vpop.permute.xlu2 %82 }
  0x75   :  { %v250_v49 = vpop.permute.xlu2 %249 }
  0x77   :  { %v58_v39 = vpop.permute.xlu0 %57  ;;  %v68_v40 = vpop.permute.xlu1 %67 }
  0x7d   :  { %v260_v0 = vpop.permute.xlu2 %259 }
  0x7f   :  { %v63_v42 = vpop.permute.xlu0 %62  ;;  %v73_v43 = vpop.permute.xlu1 %72 }
  0x85   :  { %v270_v23 = vpop.permute.xlu2 %269 }
  0x87   :  { %v240_v45 = vpop.permute.xlu0 %239  ;;  %v245_v46 = vpop.permute.xlu1 %244 }
  0x8f   :  { %v255_v50 = vpop.permute.xlu0 %254  ;;  %v88_v60 = vpop.permute.xlu1 %87 }
  0x97   :  { %v93_v4 = vpop.permute.xlu0 %92  ;;  %v265_v19 = vpop.permute.xlu1 %264 }
  0x9f   :  { %v275_v26 = vpop.permute.xlu0 %274  ;;  %v302_v34 = vpop.permute.xlu1 %301 }
  0xa0   :  { %v304_v36 = vperm.slane %v302_v34, 0 }
  0xc2   :  { %v201_v47 = vpop.f32.mrf.mxu0  ;;  %v206_v48 = vpop.f32.mrf.mxu1 }
  0xc3   :  { %v202_v51 = vadd.f32 %v201_v47, %v58_v39  ;;  %v207_v52 = vadd.f32 %v206_v48, %v68_v40 }
  0xc5   :  { %v221_v57 = vmax.f32 %v202_v51, 0.0  ;;  %v223_v61 = vmax.f32 %v207_v52, 0.0 }
  0xc7   :  { %v277_v1 = vmul.f32 %v240_v45, %v221_v57  ;;  %v279_v5 = vmul.f32 %v250_v49, %v223_v61 }
  0xc9   :  { %v211_v53 = vpop.f32.mrf.mxu2  ;;  %v216_v54 = vpop.f32.mrf.mxu3 }
  0xca   :  { %v203_v55 = vpop.f32.mrf.mxu0  ;;  %v208_v56 = vpop.f32.mrf.mxu1  ;;  %v212_v62 = vadd.f32 %v211_v53, %v78_v41  ;;  %v217_v7 = vadd.f32 %v216_v54, %v88_v60 }
  0xcb   :  { %v204_v58 = vadd.f32 %v203_v55, %v63_v42  ;;  %v209_v59 = vadd.f32 %v208_v56, %v73_v43 }
  0xcc   :  { %v225_v6 = vmax.f32 %v212_v62, 0.0  ;;  %v227_v17 = vmax.f32 %v217_v7, 0.0 }
  0xcd   :  { %v222_v63 = vmax.f32 %v204_v58, 0.0  ;;  %v224_v3 = vmax.f32 %v209_v59, 0.0 }
  0xce   :  { %v281_v16 = vmul.f32 %v260_v0, %v225_v6  ;;  %v283_v24 = vmul.f32 %v270_v23, %v227_v17 }
  0xcf   :  { %v278_v2 = vmul.f32 %v245_v46, %v222_v63  ;;  %v280_v12 = vmul.f32 %v255_v50, %v224_v3 }
  0xd1   :  { %v285_v8 = vadd.f32 %v278_v2, %v277_v1  ;;  %v213_v9 = vpop.f32.mrf.mxu2  ;;  %v218_v10 = vpop.f32.mrf.mxu3 }
  0xd2   :  { %v214_v11 = vadd.f32 %v213_v9, %v83_v44  ;;  %v219_v14 = vadd.f32 %v218_v10, %v93_v4 }
  0xd3   :  { %v286_v13 = vadd.f32 %v285_v8, %v279_v5 }
  0xd4   :  { %v226_v15 = vmax.f32 %v214_v11, 0.0  ;;  %v228_v22 = vmax.f32 %v219_v14, 0.0 }
  0xd5   :  { %v287_v18 = vadd.f32 %v286_v13, %v280_v12 }
  0xd6   :  { %v282_v20 = vmul.f32 %v265_v19, %v226_v15  ;;  %v284_v27 = vmul.f32 %v275_v26, %v228_v22 }
  0xd7   :  { %v288_v21 = vadd.f32 %v287_v18, %v281_v16 }
  0xd9   :  { %v289_v25 = vadd.f32 %v288_v21, %v282_v20 }
  0xdb   :  { %v290_v28 = vadd.f32 %v289_v25, %v283_v24 }
  0xdd   :  { %v291_v29 = vadd.f32 %v290_v28, %v284_v27 }
  0xdf   :  { %v292_v30 = vrot.slane %v291_v29, 4 }
  0xe1   :  { %v293_v31 = vadd.f32 %v292_v30, %v291_v29 }
  0xe3   :  { %v294_v32 = vrot.slane %v293_v31, 2 }
  0xe5   :  { %v295_v33 = vadd.f32 %v294_v32, %v293_v31 }
  0xe7   :  { %v296_v35 = vrot.slane %v295_v33, 1 }
  0xe9   :  { %v297_v37 = vadd.f32 %v296_v35, %v295_v33 }
  0xeb   :  { %v305_v38 = vadd.f32 %v304_v36, %v297_v37 }
  0xed   :  { %306 = vst [vmem:[#allocation3] sm:$0x1] %v305_v38 }
  0xee   :  { %317 = dma.vmem_to_hbm [thread:$0]  %s313_s3, 16, %s315_s24, [#allocation4]  }
  0xef   :  { %440 = dma.done.wait [#allocation4], 16  }
  0xf0   :  { %441 = vsyncadd [#allocation4], 4294967280 }
  0xf1   :  { %322 = vsyncpa [#allocation4], 1 }

</bundles_post_ra>
